<compile_context>
chip_gen: v7x
topology: tpu7x:2x2x1
jax: 0.10.0
libtpu: 0.0.40
codegen_flags: <defaults>
</compile_context>

<pallas_src>
import jax
import jax.numpy as jnp
from jax.experimental import pallas as pl
from jax.experimental.pallas import tpu as pltpu

EPS = 1e-5
DROPOUT_P = 0.5
LANES = 128            # TPU lane width; the batch dim is packed onto lanes
MAX_TILE_ROWS = 4096   # rows of the (rows, 128) layout per grid step (2 MiB)


def _hash_u32(v):
    """Cheap deterministic xor-shift-multiply hash, uint32 -> uint32."""
    v = v ^ (v >> jnp.uint32(16))
    v = v * jnp.uint32(0x045D9F3B)
    v = v ^ (v >> jnp.uint32(16))
    v = v * jnp.uint32(0x045D9F3B)
    v = v ^ (v >> jnp.uint32(16))
    return v


def net_kernel(meta_ref, params_ref, x_ref, o_ref, s_ref, q_ref, stats_ref):
    phase = pl.program_id(0)      # 0: accumulate BN stats, 1: produce output
    rtile = pl.program_id(1)      # row-tile index of the lane-packed layout
    tile_rows, lanes = x_ref.shape

    @pl.when(jnp.logical_and(phase == 0, rtile == 0))
    def _init():
        s_ref[...] = jnp.zeros((1, lanes), jnp.float32)
        q_ref[...] = jnp.zeros((1, lanes), jnp.float32)

    @pl.when(phase == 0)
    def _accumulate():
        # Raw-x moments only; padded lanes are zero, so no mask is needed
        # (we divide by the true N later).  ~3 VALU ops / element.
        x = x_ref[...]                                   # (tile_rows, 128) f32
        s_ref[...] += jnp.sum(x, axis=0, keepdims=True)
        q_ref[...] += jnp.sum(x * x, axis=0, keepdims=True)
        # No output store in phase 0: out_spec pins all phase-0 iterations to
        # output block 0, which phase 1 overwrites before any writeback.

    @pl.when(jnp.logical_and(phase == 1, rtile == 0))
    def _finalize_stats():
        # Fold BatchNorm (training-mode batch stats), dropout scaling and
        # Linear2 into three scalars; cache them in SMEM for all phase-1 tiles.
        #   h_k - mean_hk = w1k * (x - mean_x)
        #   var_hk        = w1k^2 * var_x
        #   out = sum_k keep_k * 2 * w2k * (h_k - mean_hk) * rsqrt(var_hk+eps) + b2
        n_valid = meta_ref[0]
        inv_n = 1.0 / jnp.maximum(n_valid, 1).astype(jnp.float32)
        mean_x = jnp.sum(s_ref[...]) * inv_n
        var_x = jnp.sum(q_ref[...]) * inv_n - mean_x * mean_x  # biased variance
        w10 = params_ref[0]
        w11 = params_ref[1]
        w20 = params_ref[4]
        w21 = params_ref[5]
        inv_std0 = jax.lax.rsqrt(w10 * w10 * var_x + EPS)
        inv_std1 = jax.lax.rsqrt(w11 * w11 * var_x + EPS)
        scale = jnp.float32(1.0 / (1.0 - DROPOUT_P))
        stats_ref[0] = mean_x
        stats_ref[1] = scale * w20 * w10 * inv_std0     # a0
        stats_ref[2] = scale * w21 * w11 * inv_std1     # a1

    @pl.when(phase == 1)
    def _apply():
        seed = meta_ref[1]
        b2 = params_ref[6]
        mean_x = stats_ref[0]
        a0 = stats_ref[1]
        a1 = stats_ref[2]

        x = x_ref[...]                                   # (tile_rows, 128) f32

        # Global flat sample index (row-major packing == original batch index)
        # drives a tiling-independent counter-based dropout mask.
        # Note: int32 index; fine for n_pad < ~2.1e9 samples.
        row_i = jax.lax.broadcasted_iota(jnp.int32, (tile_rows, lanes), 0)
        col_i = jax.lax.broadcasted_iota(jnp.int32, (tile_rows, lanes), 1)
        flat = (rtile * tile_rows + row_i) * lanes + col_i

        u = flat.astype(jnp.uint32) ^ (seed.astype(jnp.uint32) *
                                       jnp.uint32(0x9E3779B1))
        bits = _hash_u32(u)                              # single hash per sample
        keep0 = (bits >> jnp.uint32(31)) != jnp.uint32(0)            # P = 0.5
        keep1 = ((bits >> jnp.uint32(30)) & jnp.uint32(1)) != jnp.uint32(0)

        coef = jnp.where(keep0, a0, 0.0) + jnp.where(keep1, a1, 0.0)
        o_ref[...] = (x - mean_x) * coef + b2            # folded BN+drop+Linear2


def net_forward(x, w1, b1, w2, b2, seed=0):
    """x: (N,1). w1: (2,1), b1: (2,), w2: (1,2), b2: (1,)  (PyTorch layouts)."""
    n = int(x.shape[0])
    xf = jnp.asarray(x, jnp.float32).reshape(-1)

    rows = pl.cdiv(n, LANES)
    if rows <= MAX_TILE_ROWS:
        tile_rows = rows                       # full-extent block (always legal)
        rows_pad = rows
    else:
        tile_rows = MAX_TILE_ROWS              # multiple of 8 -> legal block dim
        rows_pad = pl.cdiv(rows, MAX_TILE_ROWS) * MAX_TILE_ROWS
    n_pad = rows_pad * LANES
    x_lanes = jnp.pad(xf, (0, n_pad - n)).reshape(rows_pad, LANES)
    num_row_tiles = rows_pad // tile_rows

    # Pack all 7 parameters into one SMEM scalar array:
    # [w1_f0, w1_f1, b1_f0, b1_f1, w2_f0, w2_f1, b2]
    params = jnp.concatenate([
        jnp.asarray(w1, jnp.float32).reshape(-1),
        jnp.asarray(b1, jnp.float32).reshape(-1),
        jnp.asarray(w2, jnp.float32).reshape(-1),
        jnp.asarray(b2, jnp.float32).reshape(-1),
    ])
    meta = jnp.array([n, int(seed)], dtype=jnp.int32)   # [valid N, dropout seed]

    # VMEM budget: double-buffered input + output blocks, plus tiny scratch.
    block_bytes = tile_rows * LANES * 4
    vmem_limit = max(16 << 20, 8 * block_bytes)

    out = pl.pallas_call(
        net_kernel,
        out_shape=jax.ShapeDtypeStruct((rows_pad, LANES), jnp.float32),
        # (phase, row-tile); phase-major so global BN stats are complete before
        # any output is produced.  Both axes are inherently sequential.
        grid=(2, num_row_tiles),
        in_specs=[
            pl.BlockSpec(memory_space=pltpu.MemorySpace.SMEM),        # meta
            pl.BlockSpec(memory_space=pltpu.MemorySpace.SMEM),        # params
            pl.BlockSpec((tile_rows, LANES), lambda p, r: (r, 0)),    # x tiles
        ],
        # Phase 0 pins every iteration to output block 0 (never flushed before
        # phase 1 overwrites it) -> each output block hits HBM exactly once.
        out_specs=pl.BlockSpec((tile_rows, LANES), lambda p, r: (r * p, 0)),
        scratch_shapes=[
            pltpu.VMEM((1, LANES), jnp.float32),      # sum(x)
            pltpu.VMEM((1, LANES), jnp.float32),      # sum(x*x)
            pltpu.SMEM((3,), jnp.float32),            # [mean_x, a0, a1]
        ],
        compiler_params=pltpu.CompilerParams(
            dimension_semantics=("arbitrary", "arbitrary"),
            vmem_limit_bytes=int(vmem_limit),
        ),
    )(meta, params, x_lanes)

    return out.reshape(-1)[:n].reshape(n, 1)


def net_reference(x, w1, b1, w2, b2, seed=0):
    """Pure-JAX reference with the identical (single-hash) dropout mask."""
    n = x.shape[0]
    h = x @ w1.T + b1                                      # (N, 2)
    mean = jnp.mean(h, axis=0)
    var = jnp.mean((h - mean) ** 2, axis=0)                # biased variance
    hn = (h - mean) * jax.lax.rsqrt(var + EPS)
    idx = jnp.arange(n, dtype=jnp.int32).astype(jnp.uint32)
    u = idx ^ (jnp.uint32(seed) * jnp.uint32(0x9E3779B1))
    bits = _hash_u32(u)
    keep0 = (bits >> jnp.uint32(31)) != jnp.uint32(0)
    keep1 = ((bits >> jnp.uint32(30)) & jnp.uint32(1)) != jnp.uint32(0)
    keep = jnp.stack([keep0, keep1], axis=1)
    hd = jnp.where(keep, hn * (1.0 / (1.0 - DROPOUT_P)), 0.0)
    return hd @ w2.T + b2


if __name__ == "__main__":
    key = jax.random.PRNGKey(0)
    kx, k1, k2, k3, k4 = jax.random.split(key, 5)

    N = 300  # small batch; deliberately not a multiple of 128 to exercise padding
    x = jax.random.normal(kx, (N, 1), dtype=jnp.float32)

    # Deterministic init mimicking nn.Linear's U(-1/sqrt(fan_in), 1/sqrt(fan_in)):
    w1 = jax.random.uniform(k1, (2, 1), minval=-1.0, maxval=1.0, dtype=jnp.float32)
    b1 = jax.random.uniform(k2, (2,), minval=-1.0, maxval=1.0, dtype=jnp.float32)
    bound2 = 1.0 / (2.0 ** 0.5)
    w2 = jax.random.uniform(k3, (1, 2), minval=-bound2, maxval=bound2, dtype=jnp.float32)
    b2 = jax.random.uniform(k4, (1,), minval=-bound2, maxval=bound2, dtype=jnp.float32)

    seed = 0
    out = net_forward(x, w1, b1, w2, b2, seed)
    jax.block_until_ready(out)
    assert out.shape == (N, 1) and out.dtype == jnp.float32
    assert bool(jnp.all(jnp.isfinite(out)))

    ref = net_reference(x, w1, b1, w2, b2, seed)
    assert bool(jnp.allclose(out, ref, rtol=1e-2, atol=1e-2)), (
        "max abs err %g" % float(jnp.max(jnp.abs(out - ref))))
    print("KERNEL_OK")
</pallas_src>

<mosaic_0001>
module attributes {stable_mosaic.version = 11 : i64} {
  func.func @net_kernel(%arg0: i32, %arg1: i32, %arg2: memref<2xi32, #tpu.memory_space<smem>>, %arg3: memref<7xf32, #tpu.memory_space<smem>>, %arg4: memref<3x128xf32, #tpu.memory_space<vmem>>, %arg5: memref<3x128xf32, #tpu.memory_space<vmem>>, %arg6: memref<1x128xf32, #tpu.memory_space<vmem>>, %arg7: memref<1x128xf32, #tpu.memory_space<vmem>>, %arg8: memref<3xf32, #tpu.memory_space<smem>>) attributes {dimension_semantics = [#tpu.dimension_semantics<arbitrary>, #tpu.dimension_semantics<arbitrary>], iteration_bounds = array<i64: 2, 1>, scalar_prefetch = 0 : i64, scratch_operands = 3 : i64, tpu.core_type = #tpu.core_type<tc>, window_params = [{transform_indices = @transform_0, window_bounds = array<i64: 2>}, {transform_indices = @transform_1, window_bounds = array<i64: 7>}, {transform_indices = @transform_2, window_bounds = array<i64: 3, 128>}, {transform_indices = @transform_3, window_bounds = array<i64: 3, 128>}]} {
    %c0_i32 = arith.constant 0 : i32
    %0 = arith.cmpi eq, %arg0, %c0_i32 : i32
    %c0_i32_0 = arith.constant 0 : i32
    %1 = arith.cmpi eq, %arg1, %c0_i32_0 : i32
    %2 = arith.andi %0, %1 : i1
    %3 = arith.extui %2 : i1 to i32
    %c0_i32_1 = arith.constant 0 : i32
    %4 = arith.cmpi ne, %3, %c0_i32_1 : i32
    scf.if %4 {
      %cst = arith.constant 0.000000e+00 : f32
      %16 = vector.broadcast %cst : f32 to vector<1x128xf32>
      %c0 = arith.constant 0 : index
      %c0_8 = arith.constant 0 : index
      %17 = vector.load %arg6[%c0, %c0_8] : memref<1x128xf32, #tpu.memory_space<vmem>>, vector<1x128xf32>
      tpu.vector_store %arg6[%c0, %c0_8], %16 {strides = array<i32>} : memref<1x128xf32, #tpu.memory_space<vmem>>, vector<1x128xf32>,
      %cst_9 = arith.constant 0.000000e+00 : f32
      %18 = vector.broadcast %cst_9 : f32 to vector<1x128xf32>
      %c0_10 = arith.constant 0 : index
      %c0_11 = arith.constant 0 : index
      %19 = vector.load %arg7[%c0_10, %c0_11] : memref<1x128xf32, #tpu.memory_space<vmem>>, vector<1x128xf32>
      tpu.vector_store %arg7[%c0_10, %c0_11], %18 {strides = array<i32>} : memref<1x128xf32, #tpu.memory_space<vmem>>, vector<1x128xf32>,
    } else {
    }
    %c0_i32_2 = arith.constant 0 : i32
    %5 = arith.cmpi eq, %arg0, %c0_i32_2 : i32
    %6 = arith.extui %5 : i1 to i32
    %c0_i32_3 = arith.constant 0 : i32
    %7 = arith.cmpi ne, %6, %c0_i32_3 : i32
    scf.if %7 {
      %c0 = arith.constant 0 : index
      %c0_8 = arith.constant 0 : index
      %16 = vector.load %arg4[%c0, %c0_8] : memref<3x128xf32, #tpu.memory_space<vmem>>, vector<3x128xf32>
      %c0_9 = arith.constant 0 : index
      %c0_10 = arith.constant 0 : index
      %17 = vector.load %arg6[%c0_9, %c0_10] : memref<1x128xf32, #tpu.memory_space<vmem>>, vector<1x128xf32>
      %cst = arith.constant dense<0.000000e+00> : vector<128xf32>
      %18 = vector.multi_reduction <add>, %16, %cst [0] : vector<3x128xf32> to vector<128xf32>
      %19 = vector.shape_cast %18 : vector<128xf32> to vector<1x128xf32>
      %20 = arith.addf %17, %19 : vector<1x128xf32>
      %c0_11 = arith.constant 0 : index
      %c0_12 = arith.constant 0 : index
      %21 = vector.load %arg6[%c0_11, %c0_12] : memref<1x128xf32, #tpu.memory_space<vmem>>, vector<1x128xf32>
      tpu.vector_store %arg6[%c0_11, %c0_12], %20 {strides = array<i32>} : memref<1x128xf32, #tpu.memory_space<vmem>>, vector<1x128xf32>,
      %c0_13 = arith.constant 0 : index
      %c0_14 = arith.constant 0 : index
      %22 = vector.load %arg7[%c0_13, %c0_14] : memref<1x128xf32, #tpu.memory_space<vmem>>, vector<1x128xf32>
      %23 = arith.mulf %16, %16 : vector<3x128xf32>
      %cst_15 = arith.constant dense<0.000000e+00> : vector<128xf32>
      %24 = vector.multi_reduction <add>, %23, %cst_15 [0] : vector<3x128xf32> to vector<128xf32>
      %25 = vector.shape_cast %24 : vector<128xf32> to vector<1x128xf32>
      %26 = arith.addf %22, %25 : vector<1x128xf32>
      %c0_16 = arith.constant 0 : index
      %c0_17 = arith.constant 0 : index
      %27 = vector.load %arg7[%c0_16, %c0_17] : memref<1x128xf32, #tpu.memory_space<vmem>>, vector<1x128xf32>
      tpu.vector_store %arg7[%c0_16, %c0_17], %26 {strides = array<i32>} : memref<1x128xf32, #tpu.memory_space<vmem>>, vector<1x128xf32>,
    } else {
    }
    %c1_i32 = arith.constant 1 : i32
    %8 = arith.cmpi eq, %arg0, %c1_i32 : i32
    %c0_i32_4 = arith.constant 0 : i32
    %9 = arith.cmpi eq, %arg1, %c0_i32_4 : i32
    %10 = arith.andi %8, %9 : i1
    %11 = arith.extui %10 : i1 to i32
    %c0_i32_5 = arith.constant 0 : i32
    %12 = arith.cmpi ne, %11, %c0_i32_5 : i32
    scf.if %12 {
      %c0 = arith.constant 0 : index
      %16 = memref.load %arg2[%c0] : memref<2xi32, #tpu.memory_space<smem>>
      %c1_i32_8 = arith.constant 1 : i32
      %17 = arith.maxsi %16, %c1_i32_8 : i32
      %18 = arith.sitofp %17 : i32 to f32
      %cst = arith.constant 1.000000e+00 : f32
      %19 = arith.divf %cst, %18 : f32
      %c0_9 = arith.constant 0 : index
      %c0_10 = arith.constant 0 : index
      %20 = vector.load %arg6[%c0_9, %c0_10] : memref<1x128xf32, #tpu.memory_space<vmem>>, vector<1x128xf32>
      %21 = vector.shape_cast %20 : vector<1x128xf32> to vector<1x1x128xf32>
      %cst_11 = arith.constant dense<0.000000e+00> : vector<1xf32>
      %22 = vector.multi_reduction <add>, %21, %cst_11 [1, 2] : vector<1x1x128xf32> to vector<1xf32>
      %23 = vector.shape_cast %22 : vector<1xf32> to vector<1x1x1xf32>
      %24 = vector.extract %23[0, 0, 0] : f32 from vector<1x1x1xf32>
      %25 = arith.mulf %24, %19 : f32
      %c0_12 = arith.constant 0 : index
      %c0_13 = arith.constant 0 : index
      %26 = vector.load %arg7[%c0_12, %c0_13] : memref<1x128xf32, #tpu.memory_space<vmem>>, vector<1x128xf32>
      %27 = vector.shape_cast %26 : vector<1x128xf32> to vector<1x1x128xf32>
      %cst_14 = arith.constant dense<0.000000e+00> : vector<1xf32>
      %28 = vector.multi_reduction <add>, %27, %cst_14 [1, 2] : vector<1x1x128xf32> to vector<1xf32>
      %29 = vector.shape_cast %28 : vector<1xf32> to vector<1x1x1xf32>
      %30 = vector.extract %29[0, 0, 0] : f32 from vector<1x1x1xf32>
      %31 = arith.mulf %30, %19 : f32
      %32 = arith.mulf %25, %25 : f32
      %33 = arith.subf %31, %32 : f32
      %c0_15 = arith.constant 0 : index
      %34 = memref.load %arg3[%c0_15] : memref<7xf32, #tpu.memory_space<smem>>
      %c1 = arith.constant 1 : index
      %35 = memref.load %arg3[%c1] : memref<7xf32, #tpu.memory_space<smem>>
      %c4 = arith.constant 4 : index
      %36 = memref.load %arg3[%c4] : memref<7xf32, #tpu.memory_space<smem>>
      %c5 = arith.constant 5 : index
      %37 = memref.load %arg3[%c5] : memref<7xf32, #tpu.memory_space<smem>>
      %38 = arith.mulf %34, %34 : f32
      %39 = arith.mulf %38, %33 : f32
      %cst_16 = arith.constant 9.99999974E-6 : f32
      %40 = arith.addf %39, %cst_16 : f32
      %41 = math.rsqrt %40 : f32
      %42 = arith.mulf %35, %35 : f32
      %43 = arith.mulf %42, %33 : f32
      %cst_17 = arith.constant 9.99999974E-6 : f32
      %44 = arith.addf %43, %cst_17 : f32
      %45 = math.rsqrt %44 : f32
      %c0_18 = arith.constant 0 : index
      %46 = memref.load %arg8[%c0_18] : memref<3xf32, #tpu.memory_space<smem>>
      memref.store %25, %arg8[%c0_18] : memref<3xf32, #tpu.memory_space<smem>>
      %cst_19 = arith.constant 2.000000e+00 : f32
      %47 = arith.mulf %cst_19, %36 : f32
      %48 = arith.mulf %47, %34 : f32
      %49 = arith.mulf %48, %41 : f32
      %c1_20 = arith.constant 1 : index
      %50 = memref.load %arg8[%c1_20] : memref<3xf32, #tpu.memory_space<smem>>
      memref.store %49, %arg8[%c1_20] : memref<3xf32, #tpu.memory_space<smem>>
      %cst_21 = arith.constant 2.000000e+00 : f32
      %51 = arith.mulf %cst_21, %37 : f32
      %52 = arith.mulf %51, %35 : f32
      %53 = arith.mulf %52, %45 : f32
      %c2 = arith.constant 2 : index
      %54 = memref.load %arg8[%c2] : memref<3xf32, #tpu.memory_space<smem>>
      memref.store %53, %arg8[%c2] : memref<3xf32, #tpu.memory_space<smem>>
    } else {
    }
    %c1_i32_6 = arith.constant 1 : i32
    %13 = arith.cmpi eq, %arg0, %c1_i32_6 : i32
    %14 = arith.extui %13 : i1 to i32
    %c0_i32_7 = arith.constant 0 : i32
    %15 = arith.cmpi ne, %14, %c0_i32_7 : i32
    scf.if %15 {
      %c1 = arith.constant 1 : index
      %16 = memref.load %arg2[%c1] : memref<2xi32, #tpu.memory_space<smem>>
      %c6 = arith.constant 6 : index
      %17 = memref.load %arg3[%c6] : memref<7xf32, #tpu.memory_space<smem>>
      %c0 = arith.constant 0 : index
      %18 = memref.load %arg8[%c0] : memref<3xf32, #tpu.memory_space<smem>>
      %c1_8 = arith.constant 1 : index
      %19 = memref.load %arg8[%c1_8] : memref<3xf32, #tpu.memory_space<smem>>
      %c2 = arith.constant 2 : index
      %20 = memref.load %arg8[%c2] : memref<3xf32, #tpu.memory_space<smem>>
      %c0_9 = arith.constant 0 : index
      %c0_10 = arith.constant 0 : index
      %21 = vector.load %arg4[%c0_9, %c0_10] : memref<3x128xf32, #tpu.memory_space<vmem>>, vector<3x128xf32>
      %22 = tpu.iota {dimensions = array<i32: 0>} : vector<3x128xi32>
      %23 = tpu.iota {dimensions = array<i32: 1>} : vector<3x128xi32>
      %c3_i32 = arith.constant 3 : i32
      %24 = arith.muli %arg1, %c3_i32 : i32
      %25 = vector.broadcast %24 : i32 to vector<3x128xi32>
      %26 = arith.addi %25, %22 : vector<3x128xi32>
      %c128_i32 = arith.constant 128 : i32
      %27 = vector.broadcast %c128_i32 : i32 to vector<3x128xi32>
      %28 = arith.muli %26, %27 : vector<3x128xi32>
      %29 = arith.addi %28, %23 : vector<3x128xi32>
      %c-1640531535_i32 = arith.constant -1640531535 : i32
      %30 = arith.muli %16, %c-1640531535_i32 : i32
      %31 = vector.broadcast %30 : i32 to vector<3x128xi32>
      %32 = arith.xori %29, %31 : vector<3x128xi32>
      %c16_i32 = arith.constant 16 : i32
      %33 = vector.broadcast %c16_i32 : i32 to vector<3x128xi32>
      %34 = arith.shrui %32, %33 : vector<3x128xi32>
      %35 = arith.xori %32, %34 : vector<3x128xi32>
      %c73244475_i32 = arith.constant 73244475 : i32
      %36 = vector.broadcast %c73244475_i32 : i32 to vector<3x128xi32>
      %37 = arith.muli %35, %36 : vector<3x128xi32>
      %c16_i32_11 = arith.constant 16 : i32
      %38 = vector.broadcast %c16_i32_11 : i32 to vector<3x128xi32>
      %39 = arith.shrui %37, %38 : vector<3x128xi32>
      %40 = arith.xori %37, %39 : vector<3x128xi32>
      %c73244475_i32_12 = arith.constant 73244475 : i32
      %41 = vector.broadcast %c73244475_i32_12 : i32 to vector<3x128xi32>
      %42 = arith.muli %40, %41 : vector<3x128xi32>
      %c16_i32_13 = arith.constant 16 : i32
      %43 = vector.broadcast %c16_i32_13 : i32 to vector<3x128xi32>
      %44 = arith.shrui %42, %43 : vector<3x128xi32>
      %45 = arith.xori %42, %44 : vector<3x128xi32>
      %c31_i32 = arith.constant 31 : i32
      %46 = vector.broadcast %c31_i32 : i32 to vector<3x128xi32>
      %47 = arith.shrui %45, %46 : vector<3x128xi32>
      %c0_i32_14 = arith.constant 0 : i32
      %48 = vector.broadcast %c0_i32_14 : i32 to vector<3x128xi32>
      %49 = arith.cmpi ne, %47, %48 : vector<3x128xi32>
      %c30_i32 = arith.constant 30 : i32
      %50 = vector.broadcast %c30_i32 : i32 to vector<3x128xi32>
      %51 = arith.shrui %45, %50 : vector<3x128xi32>
      %c1_i32_15 = arith.constant 1 : i32
      %52 = vector.broadcast %c1_i32_15 : i32 to vector<3x128xi32>
      %53 = arith.andi %51, %52 : vector<3x128xi32>
      %c0_i32_16 = arith.constant 0 : i32
      %54 = vector.broadcast %c0_i32_16 : i32 to vector<3x128xi32>
      %55 = arith.cmpi ne, %53, %54 : vector<3x128xi32>
      %cst = arith.constant 0.000000e+00 : f32
      %56 = vector.broadcast %19 : f32 to vector<3x128xf32>
      %57 = vector.broadcast %cst : f32 to vector<3x128xf32>
      %58 = arith.select %49, %56, %57 : vector<3x128xi1>, vector<3x128xf32>
      %cst_17 = arith.constant 0.000000e+00 : f32
      %59 = vector.broadcast %20 : f32 to vector<3x128xf32>
      %60 = vector.broadcast %cst_17 : f32 to vector<3x128xf32>
      %61 = arith.select %55, %59, %60 : vector<3x128xi1>, vector<3x128xf32>
      %62 = arith.addf %58, %61 : vector<3x128xf32>
      %63 = vector.broadcast %18 : f32 to vector<3x128xf32>
      %64 = arith.subf %21, %63 : vector<3x128xf32>
      %65 = arith.mulf %64, %62 : vector<3x128xf32>
      %66 = vector.broadcast %17 : f32 to vector<3x128xf32>
      %67 = arith.addf %65, %66 : vector<3x128xf32>
      %c0_18 = arith.constant 0 : index
      %c0_19 = arith.constant 0 : index
      %68 = vector.load %arg5[%c0_18, %c0_19] : memref<3x128xf32, #tpu.memory_space<vmem>>, vector<3x128xf32>
      tpu.vector_store %arg5[%c0_18, %c0_19], %67 {strides = array<i32>} : memref<3x128xf32, #tpu.memory_space<vmem>>, vector<3x128xf32>,
    } else {
    }
    return
  }
  func.func @transform_0(%arg0: i32, %arg1: i32) -> i32 {
    %c0_i32 = arith.constant 0 : i32
    %c0_i32_0 = arith.constant 0 : i32
    return %c0_i32 : i32
  }
  func.func @transform_1(%arg0: i32, %arg1: i32) -> i32 {
    %c0_i32 = arith.constant 0 : i32
    %c0_i32_0 = arith.constant 0 : i32
    return %c0_i32 : i32
  }
  func.func @transform_2(%arg0: i32, %arg1: i32) -> (i32, i32) {
    %c0_i32 = arith.constant 0 : i32
    %c0_i32_0 = arith.constant 0 : i32
    return %arg1, %c0_i32 : i32, i32
  }
  func.func @transform_3(%arg0: i32, %arg1: i32) -> (i32, i32) {
    %0 = arith.muli %arg1, %arg0 : i32
    %c0_i32 = arith.constant 0 : i32
    %c0_i32_0 = arith.constant 0 : i32
    return %0, %c0_i32 : i32, i32
  }
}

</mosaic_0001>

<bundles_post_ra>
// kernel: tpu_custom_call.1
= control target key start
LH: loop header
LB: loop body
LE: loop exit
PB: predicated region body
PF: predicated region fallthrough
CT: control target
= control target key end

     0   :  { %8 = vsyncpa [#allocation7], 0  ;;  %s792_s0 = inlined_call_operand.hbm [shape: s32[2], index: 0, kind: input, shape index: {}]   ;;  %s793_s1 = inlined_call_operand.vmem [shape: f32[7], index: 1, kind: input, shape index: {}]   ;;  %s794_s2 = inlined_call_operand.vmem [shape: f32[3,128], index: 2, kind: input, shape index: {}]   ;;  %s795_s3 = inlined_call_operand.hbm [shape: f32[3,128], index: 3, kind: output, shape index: {}]  }
   0x1   :  { %9 = vsyncpa [#allocation8], 0 }
   0x2   :  { %10 = vsyncpa [#allocation6], 0 }
   0x3   :  { %12 = vsyncpa [#allocation6 + $0x1], 0  ;;  %s675_s12 = smov 0   ;;  %s677_s13 = smov 0  }
   0x4   :  { %s679_s14 = smov 0  }
   0x5 LB: > { %s461_s15 = sadd.s32 4294967295, %s649_s14   ;;  %s462_s16 = sadd.s32 4294967294, %s649_s14   ;;  %s649_s14 = sphi %s679_s14, %s18_s14   ;;  %s645_s13 = sphi %s677_s13, %s801_s13   ;;  %s641_s12 = sphi %s675_s12, %s800_s12  }
   0x6   : > { %s30_s17 = sadd.s32 1, %s645_s13  ;;  %p463_p0 = scmp.ge.s32.totalorder %s649_s14, 1 }
   0x7   : > { %p32_p1 = scmp.ge.s32.totalorder %s30_s17, 2  ;;  %p131_p2 = scmp.lt.s32.totalorder %s649_s14, 3 }
   0x8   : > { %p703_p4 = scmp.eq.s32.totalorder %s461_s15, 0  ;;  %s153_s22 = sshll.u32 %s793_s1, 4  ;;  %s154_s22 = int_to_ptr.vmem [resolvable:$true] %s153_s22 }
   0x9   : > { %s803_s17 = smov (%p32_p1, %s30_s17), 0  ;;  %p697_p3 = pnand %p463_p0, %p131_p2 }
   0xa   : > { %s561_s26 = scalar_lea.hbm %s792_s0, 16 }
   0xb   : > { %p509_p5 = pneg %p697_p3  ;;  %p562_p7 = scmp.ne.s32.totalorder %s792_s0, %s561_s26 }
   0xc   : > { %p568_p11 = scmp.lt.u32.totalorder %s561_s26, %s792_s0 }
   0xd   : > { %p714_p6 = pnand %p703_p4, %p509_p5 }
   0xf   : > { %p563_p8 = pneg %p714_p6 }
  0x11   : > { %p564_p9 = pnand %p563_p8, %p562_p7 }
  0x13   : > { %p565_p10 = pneg %p564_p9 }
  0x15   : > { %p570_p12 = pnand %p568_p11, %p565_p10 }
  0x17   : > { %573 = shalt.err (!%p570_p12)
}
  0x18   : > { %s651_s4 = smov [#allocation5]   ;;  %s574_s7 = scalar_lea.vmem %s154_s22, 16 }
  0x19   : > { %512 = dma.hbm_to_smem (!%p714_p6), %s792_s0, 16, %s651_s4, [#allocation7]  }
  0x1a   : > { %p575_p13 = scmp.ne.s32.totalorder %s154_s22, %s574_s7  ;;  %p582_p2 = scmp.lt.s32.totalorder %s154_s22, %s154_s22 }
  0x1b   : > { %p583_p5 = scmp.lt.s32.totalorder %s574_s7, %s574_s7 }
  0x1c   : > { %p577_p0 = pnand %p575_p13, %p563_p8 }
  0x1d   : > { %p584_p7 = por %p583_p5, %p582_p2 }
  0x1e   : > { %p578_p1 = pneg %p577_p0 }
  0x20   : > { %p585_p9 = pnand %p584_p7, %p578_p1 }
  0x22   : > { %588 = shalt.err (!%p585_p9)
}
  0x23   : > { %s652_s8 = smov [#allocation9]   ;;  %173 = sbr.rel (%p697_p3) target bundleno = 428 (0x1ac), region = 32 }
  0x24   : > { %515 = dma.vmem_to_smem (!%p714_p6), %s154_s22, 16, %s652_s8, [#allocation8]  }
  0x2a   : > { %628 = dma.done.wait (%p703_p4), [#allocation7], 16  }
  0x2b   : > { %630 = vsyncadd (%p703_p4), [#allocation7], 4294967280 }
  0x2c   : > { %632 = dma.done.wait (%p703_p4), [#allocation8], 16  }
  0x2d   : > { %634 = vsyncadd (%p703_p4), [#allocation8], 4294967280 }
  0x2e   : > { %183 = sfence }
  0x2f   : > { %p206_p8 = scmp.eq.s32.totalorder %s641_s12, 0 }
  0x30   : > { %v653_v0 = vmov (%p206_p8), 0.0  }
  0x31   : > { %211 = sbr.rel (!%p206_p8) target bundleno = 56 (0x38), region = 44  ;;  %212 = vst [vmem:[#allocation2] sm:$0x1] (%p206_p8), %v653_v0  ;;  %213 = vst [vmem:[#allocation3] sm:$0x1] (%p206_p8), %v653_v0 }
  0x38 PF: > { %p471_p3 = scmp.ne.s32.totalorder %s641_s12, 0 }
  0x39   : > { %v217_v1 = vld [vmem:[%s794_s2] sm:$0x7] (!%p471_p3)  ;;  %vm219_vm0 = vcmask (!%p471_p3), 1042432   ;;  %v218_v14 = vld [vmem:[#allocation2] sm:$0x1] (!%p471_p3) }
  0x3a   : > { %216 = sbr.rel (%p471_p3) target bundleno = 76 (0x4c), region = 48  ;;  %v220_v2 = vsel (!%p471_p3), %vm219_vm0, %v217_v1, 0.0  ;;  %v230_v3 = vmul.f32 (!%p471_p3), %v217_v1, %v217_v1  ;;  %v229_v17 = vld [vmem:[#allocation3] sm:$0x1] (!%p471_p3) }
  0x3b   : > { %v221_v4 = vrot.slane (!%p471_p3), %v220_v2, 4 }
  0x3c   : > { %v231_v5 = vsel (!%p471_p3), %vm219_vm0, %v230_v3, 0.0 }
  0x3d   : > { %v222_v6 = vadd.f32 (!%p471_p3), %v221_v4, %v220_v2  ;;  %v232_v7 = vrot.slane (!%p471_p3), %v231_v5, 4 }
  0x3f   : > { %v223_v8 = vrot.slane (!%p471_p3), %v222_v6, 2  ;;  %v233_v9 = vadd.f32 (!%p471_p3), %v232_v7, %v231_v5 }
  0x41   : > { %v224_v10 = vadd.f32 %v223_v8, %v222_v6  ;;  %v234_v11 = vrot.slane %v233_v9, 2 }
  0x43   : > { %v225_v12 = vrot.slane %v224_v10, 1  ;;  %v235_v13 = vadd.f32 %v234_v11, %v233_v9 }
  0x45   : > { %v226_v15 = vadd.f32 %v225_v12, %v224_v10  ;;  %v236_v16 = vrot.slane %v235_v13, 1 }
  0x47   : > { %v227_v18 = vadd.f32 %v226_v15, %v218_v14  ;;  %v237_v19 = vadd.f32 %v236_v16, %v235_v13 }
  0x49   : > { %228 = vst [vmem:[#allocation2] sm:$0x1] %v227_v18  ;;  %v238_v20 = vadd.f32 %v237_v19, %v229_v17 }
  0x4b   : > { %239 = vst [vmem:[#allocation3] sm:$0x1] %v238_v20 }
  0x4c PF: > { %p240_p4 = scmp.eq.s32.totalorder %s641_s12, 1 }
  0x4d   : > { %vm253_vm1 = vcmask (%p240_p4), 1040384   ;;  %s245_s11 = sld [smem:[#allocation5]] (%p240_p4)  ;;  %s473_s21 = sld [smem:[#allocation9 + $0x1]] (%p240_p4) }
  0x4e   : > { %244 = sbr.rel (!%p240_p4) target bundleno = 364 (0x16c), region = 52  ;;  %s279_s19 = sld [smem:[#allocation9]] (%p240_p4) }
  0x4f   : > { %s474_s7 = sld [smem:[#allocation9 + $0x4]] (%p240_p4)  ;;  %s475_s8 = sld [smem:[#allocation9 + $0x5]] (%p240_p4) }
  0x50   : > { %v252_v21 = vld [vmem:[#allocation2] sm:$0x1] (%p240_p4) }
  0x51   : > { %v254_v23 = vsel (%p240_p4), %vm253_vm1, %v252_v21, 0.0 }
  0x52   : > { %v265_v22 = vld [vmem:[#allocation3] sm:$0x1] (%p240_p4)  ;;  %255 = vadd.xlane.f32.xlu0 (%p240_p4), %v254_v23 }
  0x53   : > { %v266_v24 = vsel (%p240_p4), %vm253_vm1, %v265_v22, 0.0  ;;  %p246_p6 = scmp.gt.s32.totalorder (%p240_p4), %s245_s11, 1  ;;  %s289_s28 = smul.f32 (%p240_p4), %s473_s21, %s473_s21 }
  0x54   : > { %s283_s24 = smul.f32 (%p240_p4), %s279_s19, %s279_s19 }
  0x55   : > { %s805_s11 = smov (!%p246_p6, %s245_s11), 1  ;;  %s297_s9 = smul.f32 2.0, %s474_s7 }
  0x56   : > { %267 = vadd.xlane.f32.xlu0 %v266_v24  ;;  %s248_s18 = scvt.s32.f32 %s805_s11  ;;  %s302_s10 = smul.f32 2.0, %s475_s8 }
  0x57   : > { %s298_s11 = smul.f32 %s297_s9, %s279_s19 }
  0x58   : > { %v249_v25 = vstv %s248_s18  ;;  %s303_s18 = smul.f32 %s473_s21, %s302_s10 }
  0x59   : > { %555 = vrcp.f32 %v249_v25 }
  0x63   : > { %v556_v26 = vpop.eup %555 }
  0x64   : > { %487 = vpush %v556_v26 }
  0x95   : > { %s488_s20 = spop %487 }
  0xdf   : > { %v256_v27 = vpop.xlane.xlu0 %255 }
  0xe0   : > { %v257_v28 = vrot.slane %v256_v27, 4 }
  0xe2   : > { %v258_v29 = vadd.f32 %v257_v28, %v256_v27 }
  0xe3   : > { %v268_v30 = vpop.xlane.xlu0 %267 }
  0xe4   : > { %v259_v31 = vrot.slane %v258_v29, 2  ;;  %v269_v32 = vrot.slane %v268_v30, 4 }
  0xe6   : > { %v270_v33 = vadd.f32 %v269_v32, %v268_v30  ;;  %v260_v34 = vadd.f32 %v259_v31, %v258_v29 }
  0xe8   : > { %v271_v35 = vrot.slane %v270_v33, 2  ;;  %v261_v36 = vrot.slane %v260_v34, 1 }
  0xea   : > { %v272_v37 = vadd.f32 %v271_v35, %v270_v33  ;;  %v262_v38 = vadd.f32 %v261_v36, %v260_v34 }
  0xec   : > { %489 = vpush %v262_v38  ;;  %v273_v39 = vrot.slane %v272_v37, 1 }
  0xee   : > { %v274_v40 = vadd.f32 %v273_v39, %v272_v37 }
  0xf0   : > { %491 = vpush %v274_v40 }
 0x11d   : > { %s490_s22 = spop %489 }
 0x11e   : > { %s264_s23 = smul.f32 %s490_s22, %s488_s20 }
 0x120   : > { %296 = sst [smem:[#allocation4]] %s264_s23  ;;  %s277_s25 = smul.f32 %s264_s23, %s264_s23 }
 0x121   : > { %s492_s26 = spop %491 }
 0x122   : > { %s276_s27 = smul.f32 %s492_s26, %s488_s20 }
 0x124   : > { %s278_s29 = ssub.f32 %s276_s27, %s277_s25 }
 0x126   : > { %s284_s30 = smul.f32 %s283_s24, %s278_s29 }
 0x127   : > { %s290_s4 = smul.f32 %s289_s28, %s278_s29 }
 0x128   : > { %s285_s5 = sadd.f32 1e-05, %s284_s30 }
 0x129   : > { %s291_s6 = sadd.f32 1e-05, %s290_s4 }
 0x12a   : > { %v286_v41 = vstv %s285_s5 }
 0x12b   : > { %557 = vrsqrt.f32 %v286_v41  ;;  %v292_v42 = vstv %s291_s6 }
 0x12c   : > { %559 = vrsqrt.f32 %v292_v42 }
 0x135   : > { %v558_v43 = vpop.eup %557 }
 0x136   : > { %v560_v44 = vpop.eup %559  ;;  %493 = vpush %v558_v43 }
 0x137   : > { %495 = vpush %v560_v44 }
 0x167   : > { %s494_s20 = spop %493 }
 0x168   : > { %s299_s22 = smul.f32 %s494_s20, %s298_s11  ;;  %s496_s23 = spop %495 }
 0x169   : > { %s304_s24 = smul.f32 %s496_s23, %s303_s18 }
 0x16a   : > { %301 = sst [smem:[#allocation4 + $0x1]] %s299_s22 }
 0x16b   : > { %306 = sst [smem:[#allocation4 + $0x2]] %s304_s24 }
 0x16c PF: > { %p476_p10 = scmp.ne.s32.totalorder %s641_s12, 1 }
 0x16d   : > { %s477_s25 = sld [smem:[#allocation5 + $0x1]] (!%p476_p10)  ;;  %v316_v45 = vlaneseq (!%p476_p10)  ;;  %s312_s21 = sld [smem:[#allocation4]] (!%p476_p10)  ;;  %v315_v63 = vld [vmem:[%s794_s2] sm:$0x7] (!%p476_p10) }
 0x16e   : > { %309 = sbr.rel (%p476_p10) target bundleno = 405 (0x195), region = 56  ;;  %s479_s19 = sld [smem:[#allocation4 + $0x1]] (!%p476_p10) }
 0x16f   : > { %v317_v46 = vshrl.u32 (!%p476_p10), %v316_v45, 7  ;;  %v319_v47 = vand.u32 (!%p476_p10), 127, %v316_v45  ;;  %s480_s27 = sld [smem:[#allocation4 + $0x2]] (!%p476_p10)  ;;  %s478_s12 = sld [smem:[#allocation9 + $0x6]] (!%p476_p10) }
 0x171   : > { %v323_v48 = vmul.u32 (!%p476_p10), 128, %v317_v46 }
 0x173   : > { %v324_v49 = vadd.s32 (!%p476_p10), %v323_v48, %v319_v47  ;;  %s325_s26 = smul.u32 (!%p476_p10), 2654435761, %s477_s25  ;;  %v346_v0 = vstv (!%p476_p10), %s312_s21 }
 0x174   : > { %v341_v62 = vstv (!%p476_p10), %s479_s19  ;;  %v347_v4 = vsub.f32 (!%p476_p10), %v315_v63, %v346_v0 }
 0x175   : > { %v326_v50 = vstv %s325_s26  ;;  %v343_v2 = vstv %s480_s27  ;;  %v349_v7 = vstv %s478_s12 }
 0x176   : > { %v327_v51 = vxor.u32 %v326_v50, %v324_v49 }
 0x178   : > { %v328_v52 = vshrl.u32 %v327_v51, 16 }
 0x17a   : > { %v329_v53 = vxor.u32 %v328_v52, %v327_v51 }
 0x17c   : > { %v330_v54 = vmul.u32 73244475, %v329_v53 }
 0x17e   : > { %v331_v55 = vshrl.u32 %v330_v54, 16 }
 0x180   : > { %v332_v56 = vxor.u32 %v331_v55, %v330_v54 }
 0x182   : > { %v333_v57 = vmul.u32 73244475, %v332_v56 }
 0x184   : > { %v334_v58 = vshrl.u32 %v333_v57, 16 }
 0x186   : > { %v335_v59 = vxor.u32 %v334_v58, %v333_v57 }
 0x188   : > { %v336_v60 = vshrl.u32 %v335_v59, 31  ;;  %v338_v61 = vshrl.u32 %v335_v59, 30 }
 0x18a   : > { %vm337_vm2 = vcmp.ne.s32.totalorder %v336_v60, 0  ;;  %v339_v1 = vand.u32 1, %v338_v61 }
 0x18b   : > { %v342_v3 = vsel %vm337_vm2, %v341_v62, 0.0 }
 0x18c   : > { %vm340_vm3 = vcmp.ne.s32.totalorder %v339_v1, 0 }
 0x18d   : > { %v344_v5 = vsel %vm340_vm3, %v343_v2, 0.0 }
 0x18e   : > { %v345_v6 = vadd.f32 %v344_v5, %v342_v3 }
 0x190   : > { %v348_v8 = vmul.f32 %v347_v4, %v345_v6 }
 0x192   : > { %v350_v9 = vadd.f32 %v349_v7, %v348_v8 }
 0x194   : > { %351 = vst [vmem:[#allocation10] sm:$0x7] %v350_v9 }
 0x195 PF: > { %p758_p11 = scmp.eq.s32.totalorder %s461_s15, 1  ;;  %s654_s4 = smov [#allocation10]  }
 0x196   : > { %s367_s5 = sshll.u32 %s654_s4, 4  ;;  %s368_s5 = int_to_ptr.vmem [resolvable:$true] %s367_s5 }
 0x197   : > { %s589_s6 = scalar_lea.vmem %s368_s5, 64  ;;  %s595_s7 = scalar_lea.vmem %s368_s5, 128 }
 0x198   : > { %p590_p12 = scmp.ne.s32.totalorder %s368_s5, %s589_s6  ;;  %p596_p1 = scmp.lt.s32.totalorder %s368_s5, %s368_s5 }
 0x199   : > { %p597_p2 = scmp.lt.s32.totalorder %s595_s7, %s589_s6 }
 0x19a   : > { %p591_p13 = pnand %p590_p12, %p758_p11 }
 0x19b   : > { %p598_p5 = por %p597_p2, %p596_p1 }
 0x19c   : > { %p592_p0 = pneg %p591_p13 }
 0x19e   : > { %p599_p7 = pnand %p598_p5, %p592_p0 }
 0x1a0   : > { %602 = shalt.err (!%p599_p7)
}
 0x1a1   : > { %s603_s9 = scalar_lea.hbm %s795_s3, 64 }
 0x1a2   : > { %p604_p9 = scmp.ne.s32.totalorder %s795_s3, %s603_s9  ;;  %p609_p4 = scmp.lt.u32.totalorder %s603_s9, %s795_s3 }
 0x1a4   : > { %p605_p8 = pnand %p604_p9, %p758_p11 }
 0x1a6   : > { %p606_p3 = pneg %p605_p8 }
 0x1a8   : > { %p611_p6 = pnand %p609_p4, %p606_p3 }
 0x1aa   : > { %614 = shalt.err (!%p611_p6)
}
 0x1ab   : > { %506 = dma.vmem_to_hbm [thread:$0]  (%p758_p11), %s368_s5, 64, %s795_s3, [#allocation6]  }
 0x1ac PF: > { %p525_p10 = scmp.ge.s32.totalorder %s649_s14, 2  ;;  %p526_p12 = scmp.eq.s32.totalorder %s462_s16, 1 }
 0x1ae   : > { %p517_p13 = pnand %p526_p12, %p525_p10 }
 0x1b0   : > { %636 = dma.done.wait (!%p517_p13), [#allocation6], 64  }
 0x1b1   : > { %638 = vsyncadd (!%p517_p13), [#allocation6], 4294967232  ;;  %s18_s14 = sadd.s32 1, %s649_s14   ;;  %s800_s12 = smov %s645_s13 }
 0x1b2   : > { %p15_p0 = scmp.ge.s32.totalorder %s18_s14, 4   ;;  %s801_s13 = smov %s803_s17 }
 0x1b4   :  { %17 = sbr.rel (!%p15_p0) target bundleno = 5 (0x5), region = 96 }
 0x1bb   :  { %385 = vsyncpa [#allocation6], 1 }
 0x1bc   :  { %387 = vsyncpa [#allocation6 + $0x1], 1 }
 0x1bd   :  { %388 = vsyncpa [#allocation7], 1 }
 0x1be   :  { %390 = vsyncpa [#allocation7 + $0x1], 1 }
 0x1bf   :  { %391 = vsyncpa [#allocation8], 1 }
 0x1c0   :  { %393 = vsyncpa [#allocation8 + $0x1], 1 }

</bundles_post_ra>
